<compile_context>
chip_gen: v7x
topology: tpu7x:2x2x1
jax: 0.10.0
libtpu: 0.0.40
codegen_flags: <defaults>
</compile_context>

<pallas_src>
import jax
import jax.numpy as jnp
from jax.experimental import pallas as pl
from jax.experimental.pallas import tpu as pltpu

N_STATES = 4       # CartPole-v1 observation dim
N_ACTIONS = 2      # CartPole-v1 action dim
HIDDEN = 10

IN_AUG = N_STATES + 1     # features + constant ones row (bias fold)
ONE_ROW = N_STATES        # index of the ones row inside x_aug
H_AUG = 16                # >= HIDDEN + 1 (bias-carry row), sublane multiple

LANE = 128                # TPU lane width
SINGLE_TILE_MAX = 4096    # below this: one lane tile, grid=(1,)
TB_CAP = 8192             # lane-tile cap; VMEM stays tiny on all generations


def net_kernel(w1_ref, w2_ref, w3_ref, x_ref, o_ref):
    """w*_ref: bias-augmented weights (constant index_map -> resident).
    x_ref: (IN_AUG, TB) activations, batch on lanes; row ONE_ROW is all ones.
    o_ref: (N_ACTIONS, TB) Q-values, batch on lanes.
    """
    x = x_ref[...]
    # Row HIDDEN of h1/h2 equals relu(1) == 1 and carries the next layer's
    # bias, so no in-kernel bias broadcast is ever needed.
    h1 = jnp.maximum(
        jnp.dot(w1_ref[...], x, preferred_element_type=jnp.float32), 0.0)   # F.relu
    h2 = jnp.maximum(
        jnp.dot(w2_ref[...], h1, preferred_element_type=jnp.float32), 0.0)  # F.relu
    o_ref[...] = jnp.dot(w3_ref[...], h2, preferred_element_type=jnp.float32)


def _tile_plan(batch):
    """Pick (lane_tile, padded_batch).

    Small batches: a single lane tile (grid=(1,)) -- dual-core sharding can't
    amortize its setup on a ~KiB problem.  Large batches: aim for >= 4 tiles
    (v7x keeps both TensorCores busy) while capping the tile at TB_CAP.
    """
    b128 = ((batch + LANE - 1) // LANE) * LANE
    if b128 <= SINGLE_TILE_MAX:
        return b128, b128
    # ~ceil(b128 / 4), rounded up to a lane multiple, capped.
    tb = min(TB_CAP, ((b128 + 4 * LANE - 1) // (4 * LANE)) * LANE)
    b_pad = ((b128 + tb - 1) // tb) * tb
    return tb, b_pad


def _forward_aug(x, w1a, w2a, w3a):
    """x: (B, N_STATES) f32 -> (B, N_ACTIONS) f32 Q-values."""
    batch = x.shape[0]
    tb, b_pad = _tile_plan(batch)
    grid = (b_pad // tb,)

    # Layout flip (batch -> lanes) + the constant ones row that carries the
    # biases through the augmented weights.  Padded columns are all zero
    # (ones row included), so they produce exactly 0 and are sliced off.
    x_aug = jnp.concatenate(
        [x.T.astype(jnp.float32), jnp.ones((1, batch), jnp.float32)], axis=0)
    x_aug = jnp.pad(x_aug, ((0, 0), (0, b_pad - batch)))          # (IN_AUG, b_pad)

    out_t = pl.pallas_call(
        net_kernel,
        out_shape=jax.ShapeDtypeStruct((N_ACTIONS, b_pad), jnp.float32),
        grid=grid,
        in_specs=[
            # sub-KiB weight DMAs with constant block index -> fetched once,
            # resident across every grid step
            pl.BlockSpec((H_AUG, IN_AUG), lambda i: (0, 0)),
            pl.BlockSpec((H_AUG, H_AUG), lambda i: (0, 0)),
            pl.BlockSpec((N_ACTIONS, H_AUG), lambda i: (0, 0)),
            # lane-dense, double-buffered activation tiles
            pl.BlockSpec((IN_AUG, tb), lambda i: (0, i)),
        ],
        out_specs=pl.BlockSpec((N_ACTIONS, tb), lambda i: (0, i)),
        compiler_params=pltpu.CompilerParams(
            dimension_semantics=("parallel",),   # v7x: shard batch tiles over both TCs
        ),
    )(w1a, w2a, w3a, x_aug)

    return out_t[:, :batch].T                                     # (B, N_ACTIONS)


net_forward = jax.jit(_forward_aug)


def init_params(key):
    """Deterministic synthetic init matching the torch module's shapes.

    Weights in PyTorch layout (out, in), ~ N(0, 0.1) as in Net.__init__;
    biases (out,) ~ U(-1/sqrt(fan_in), 1/sqrt(fan_in)) (torch Linear default).
    """
    ks = jax.random.split(key, 6)

    def w(k, fan_out, fan_in):
        return (0.1 * jax.random.normal(k, (fan_out, fan_in))).astype(jnp.float32)

    def b(k, fan_out, fan_in):
        bound = 1.0 / jnp.sqrt(float(fan_in))
        return jax.random.uniform(
            k, (fan_out,), minval=-bound, maxval=bound
        ).astype(jnp.float32)

    w1 = w(ks[0], HIDDEN, N_STATES)
    b1 = b(ks[1], HIDDEN, N_STATES)
    w2 = w(ks[2], HIDDEN, HIDDEN)
    b2 = b(ks[3], HIDDEN, HIDDEN)
    w3 = w(ks[4], N_ACTIONS, HIDDEN)
    b3 = b(ks[5], N_ACTIONS, HIDDEN)
    return (w1, b1, w2, b2, w3, b3)


def pack_params(w1, b1, w2, b2, w3, b3):
    """Fold biases into zero-padded, bias-augmented weight matrices.

    Column HIDDEN is the bias column; row HIDDEN of w1a/w2a is the carry row
    that keeps a constant 1 flowing through the ReLUs (relu(1) == 1).
    """
    w1a = jnp.zeros((H_AUG, IN_AUG), jnp.float32)
    w1a = w1a.at[:HIDDEN, :N_STATES].set(w1)
    w1a = w1a.at[:HIDDEN, ONE_ROW].set(b1)
    w1a = w1a.at[HIDDEN, ONE_ROW].set(1.0)

    w2a = jnp.zeros((H_AUG, H_AUG), jnp.float32)
    w2a = w2a.at[:HIDDEN, :HIDDEN].set(w2)
    w2a = w2a.at[:HIDDEN, HIDDEN].set(b2)
    w2a = w2a.at[HIDDEN, HIDDEN].set(1.0)

    w3a = jnp.zeros((N_ACTIONS, H_AUG), jnp.float32)
    w3a = w3a.at[:, :HIDDEN].set(w3)
    w3a = w3a.at[:, HIDDEN].set(b3)
    return w1a, w2a, w3a


def net_reference(x, params):
    w1, b1, w2, b2, w3, b3 = params
    h1 = jnp.maximum(x @ w1.T + b1, 0.0)
    h2 = jnp.maximum(h1 @ w2.T + b2, 0.0)
    return h2 @ w3.T + b3


if __name__ == "__main__":
    key = jax.random.PRNGKey(0)
    k_param, k1, k2, k3 = jax.random.split(key, 4)

    params = init_params(k_param)
    w1a, w2a, w3a = pack_params(*params)

    # (online per-env-step batch, single-tile replay batch, multi-tile replay sweep)
    for batch, k in ((8, k1), (256, k2), (40000, k3)):
        x = jax.random.normal(k, (batch, N_STATES), dtype=jnp.float32)
        out = jax.block_until_ready(net_forward(x, w1a, w2a, w3a))
        ref = net_reference(x, params)
        assert out.shape == (batch, N_ACTIONS)
        assert jnp.allclose(out, ref, atol=1e-5, rtol=1e-5), f"mismatch at B={batch}"

    print("KERNEL_OK")
</pallas_src>

<mosaic_0001>
module attributes {stable_mosaic.version = 11 : i64} {
  func.func @net_kernel(%arg0: i32, %arg1: memref<16x5xf32, #tpu.memory_space<vmem>>, %arg2: memref<16x16xf32, #tpu.memory_space<vmem>>, %arg3: memref<2x16xf32, #tpu.memory_space<vmem>>, %arg4: memref<5x128xf32, #tpu.memory_space<vmem>>, %arg5: memref<2x128xf32, #tpu.memory_space<vmem>>) attributes {dimension_semantics = [#tpu.dimension_semantics<parallel>], iteration_bounds = array<i64: 1>, scalar_prefetch = 0 : i64, scratch_operands = 0 : i64, tpu.core_type = #tpu.core_type<tc>, window_params = [{pipeline_mode = #tpu.pipeline_mode<synchronous>, transform_indices = @transform_0, window_bounds = array<i64: 16, 5>}, {pipeline_mode = #tpu.pipeline_mode<synchronous>, transform_indices = @transform_1, window_bounds = array<i64: 16, 16>}, {pipeline_mode = #tpu.pipeline_mode<synchronous>, transform_indices = @transform_2, window_bounds = array<i64: 2, 16>}, {transform_indices = @transform_3, window_bounds = array<i64: 5, 128>}, {transform_indices = @transform_4, window_bounds = array<i64: 2, 128>}]} {
    %c0 = arith.constant 0 : index
    %c0_0 = arith.constant 0 : index
    %0 = vector.load %arg4[%c0, %c0_0] : memref<5x128xf32, #tpu.memory_space<vmem>>, vector<5x128xf32>
    %c0_1 = arith.constant 0 : index
    %c0_2 = arith.constant 0 : index
    %1 = vector.load %arg1[%c0_1, %c0_2] : memref<16x5xf32, #tpu.memory_space<vmem>>, vector<16x5xf32>
    %cst = arith.constant dense<0.000000e+00> : vector<16x128xf32>
    %2 = tpu.matmul %1, %0, %cst {dimension_numbers = #tpu.dot_dimension_numbers<[1], [0], [0], [1], [0, 0, 1, 1], [], []>} : vector<16x5xf32>, vector<5x128xf32>, vector<16x128xf32> -> vector<16x128xf32>
    %cst_3 = arith.constant 0.000000e+00 : f32
    %3 = vector.broadcast %cst_3 : f32 to vector<16x128xf32>
    %4 = arith.maximumf %2, %3 : vector<16x128xf32>
    %c0_4 = arith.constant 0 : index
    %c0_5 = arith.constant 0 : index
    %5 = vector.load %arg2[%c0_4, %c0_5] : memref<16x16xf32, #tpu.memory_space<vmem>>, vector<16x16xf32>
    %cst_6 = arith.constant dense<0.000000e+00> : vector<16x128xf32>
    %6 = tpu.matmul %5, %4, %cst_6 {dimension_numbers = #tpu.dot_dimension_numbers<[1], [0], [0], [1], [0, 0, 1, 1], [], []>} : vector<16x16xf32>, vector<16x128xf32>, vector<16x128xf32> -> vector<16x128xf32>
    %cst_7 = arith.constant 0.000000e+00 : f32
    %7 = vector.broadcast %cst_7 : f32 to vector<16x128xf32>
    %8 = arith.maximumf %6, %7 : vector<16x128xf32>
    %c0_8 = arith.constant 0 : index
    %c0_9 = arith.constant 0 : index
    %9 = vector.load %arg3[%c0_8, %c0_9] : memref<2x16xf32, #tpu.memory_space<vmem>>, vector<2x16xf32>
    %cst_10 = arith.constant dense<0.000000e+00> : vector<2x128xf32>
    %10 = tpu.matmul %9, %8, %cst_10 {dimension_numbers = #tpu.dot_dimension_numbers<[1], [0], [0], [1], [0, 0, 1, 1], [], []>} : vector<2x16xf32>, vector<16x128xf32>, vector<2x128xf32> -> vector<2x128xf32>
    %c0_11 = arith.constant 0 : index
    %c0_12 = arith.constant 0 : index
    %11 = vector.load %arg5[%c0_11, %c0_12] : memref<2x128xf32, #tpu.memory_space<vmem>>, vector<2x128xf32>
    tpu.vector_store %arg5[%c0_11, %c0_12], %10 {strides = array<i32>} : memref<2x128xf32, #tpu.memory_space<vmem>>, vector<2x128xf32>,
    return
  }
  func.func @transform_0(%arg0: i32) -> (i32, i32) {
    %c0_i32 = arith.constant 0 : i32
    %c0_i32_0 = arith.constant 0 : i32
    %c0_i32_1 = arith.constant 0 : i32
    return %c0_i32, %c0_i32_0 : i32, i32
  }
  func.func @transform_1(%arg0: i32) -> (i32, i32) {
    %c0_i32 = arith.constant 0 : i32
    %c0_i32_0 = arith.constant 0 : i32
    %c0_i32_1 = arith.constant 0 : i32
    return %c0_i32, %c0_i32_0 : i32, i32
  }
  func.func @transform_2(%arg0: i32) -> (i32, i32) {
    %c0_i32 = arith.constant 0 : i32
    %c0_i32_0 = arith.constant 0 : i32
    %c0_i32_1 = arith.constant 0 : i32
    return %c0_i32, %c0_i32_0 : i32, i32
  }
  func.func @transform_3(%arg0: i32) -> (i32, i32) {
    %c0_i32 = arith.constant 0 : i32
    %c0_i32_0 = arith.constant 0 : i32
    return %c0_i32, %arg0 : i32, i32
  }
  func.func @transform_4(%arg0: i32) -> (i32, i32) {
    %c0_i32 = arith.constant 0 : i32
    %c0_i32_0 = arith.constant 0 : i32
    return %c0_i32, %arg0 : i32, i32
  }
}

</mosaic_0001>

<bundles_post_ra>
// kernel: _forward_aug.1
= control target key start
LH: loop header
LB: loop body
LE: loop exit
PB: predicated region body
PF: predicated region fallthrough
CT: control target
= control target key end

     0   :  { %vm27_vm0 = vcmask 1044480   ;;  %vm20_vm1 = vcmask 39936   ;;  %vm110_vm2 = vcmask 130048   ;;  %v318_v10 = vmov 0.0|0.0   ;;  %s370_s3 = inlined_call_operand.vmem [shape: f32[5,128], index: 3, kind: input, shape index: {}]   ;;  %s371_s0 = inlined_call_operand.vmem [shape: f32[16,5], index: 0, kind: input, shape index: {}]   ;;  %s372_s1 = inlined_call_operand.vmem [shape: f32[16,16], index: 1, kind: input, shape index: {}]   ;;  %s373_s2 = inlined_call_operand.vmem [shape: f32[2,16], index: 2, kind: input, shape index: {}]   ;;  %s374_s4 = inlined_call_operand.vmem [shape: f32[2,128], index: 4, kind: output, shape index: {}]  }
   0x1   :  { %v17_v0 = vld [vmem:[%s370_s3] sm:$0x1f]  ;;  %v19_v2 = vld [vmem:[%s371_s0 + $0x8] sm:$0xff]  ;;  %vm319_vm3 = vmmov 0   ;;  %v320_v11 = vmov 0.0  }
   0x2   :  { %v18_v1 = vld [vmem:[%s371_s0] sm:$0xff]  ;;  %289 = vmatprep.subr.msk.mxu0 %vm27_vm0, %v17_v0  ;;  %v109_v9 = vld [vmem:[%s372_s1 + $0x8] sm:$0xff] }
   0x3   :  { %291 = vmatprep.mubr.msk.f32.mxu0 %vm20_vm1, %v18_v1  ;;  %290 = vmatpush3.msk.msra.mxu0 %vm27_vm0, %v17_v0  ;;  %v108_v3 = vld [vmem:[%s372_s1] sm:$0xff] }
   0x4   :  { %292 = vmatmul.mubr.msk.f32.vlgmr.msra.gmra.mrb[0].mxu0 %vm20_vm1, %v19_v2  ;;  %298 = vmatprep.mubr.msk.f32.mxu1 %vm110_vm2, %v108_v3  ;;  %v194_v17 = vld [vmem:[%s373_s2] sm:$0x3] }
   0x5   :  { %312 = vmatprep.subr.bf16.mxu0 %v318_v10  ;;  %305 = vmatprep.mubr.msk.f32.mxu0 %vm319_vm3, %v320_v11 }
  0xd7   :  { %v293_v4 = vpop.f32.mrb[0].mxu0 }
  0xd8   :  { %v107_v5 = vmax.f32 %v293_v4, 0.0  ;;  %v97_v6 = vpop.f32.mrb[1].mxu0 }
  0xd9   :  { %v106_v7 = vmax.f32 %v97_v6, 0.0 }
  0xdb   :  { %v308_v8 = vpack.c.bf16 %v107_v5, %v106_v7 }
  0xdd   :  { %309 = vmatprep.subr.bf16.mxu1 %v308_v8 }
  0xde   :  { %311 = vmatpush3.bf16.msra.mxu1 %v308_v8 }
  0xe1   :  { %299 = vmatmul.mubr.msk.f32.vlgmr.msra.gmra.mrb[0].mxu1 %vm110_vm2, %v109_v9 }
 0x1b4   :  { %v300_v12 = vpop.f32.mrb[0].mxu1 }
 0x1b5   :  { %v193_v13 = vmax.f32 %v300_v12, 0.0  ;;  %v183_v14 = vpop.f32.mrb[1].mxu1 }
 0x1b6   :  { %v192_v15 = vmax.f32 %v183_v14, 0.0 }
 0x1b8   :  { %v313_v16 = vpack.c.bf16 %v193_v13, %v192_v15 }
 0x1ba   :  { %314 = vmatpush3.bf16.msra.mxu0 %v313_v16 }
 0x1bd   :  { %306 = vmatmul.mubr.msk.f32.vlgmr.msra.gmra.mrb[2].mxu0 %vm110_vm2, %v194_v17 }
 0x290   :  { %v264_v18 = vpop.f32.mrb[2].mxu0 }
 0x291   :  { %268 = vst [vmem:[%s374_s4] sm:$0x3] %v264_v18  ;;  %v307_v19 = vpop.f32.mrb[3].mxu0 }

</bundles_post_ra>
